<compile_context>
chip_gen: v7x
topology: tpu7x:2x2x1
jax: 0.10.0
libtpu: 0.0.40
codegen_flags: <defaults>
</compile_context>

<pallas_src>
import functools

import jax
import jax.numpy as jnp
from jax.experimental import pallas as pl
from jax.experimental.pallas import tpu as pltpu

_LANE = 128
_SUBLANE = 8


def _round_up(n, m):
    return ((n + m - 1) // m) * m


# ----------------------------- Pallas kernel -----------------------------

def _fused_mlp_kernel(x_ref, w1_ref, b1_ref, w2_ref, b2_ref, o_ref):
    """x:(Tm,Kp) w1:(Kp,Hp) b1:(1,Hp) w2:(Hp,Np) b2:(1,Np) o:(Tm,Np); all f32 VMEM."""
    # l1: x @ W1 + b1   (MXU, f32 accumulate)
    h = jnp.dot(x_ref[...], w1_ref[...], preferred_element_type=jnp.float32)
    h = h + b1_ref[...]
    # sin_fun: relu(h)/h * |sin(h)|  ==  step(h>0) * |sin(h)|
    # Padded hidden columns have h == 0 -> act == 0, so no NaN and no explicit mask.
    act = jnp.where(h > 0.0, jnp.abs(jnp.sin(h)), 0.0)
    # l2: act @ W2 + b2, lane-dense store
    out = jnp.dot(act, w2_ref[...], preferred_element_type=jnp.float32)
    o_ref[...] = out + b2_ref[...]


# ------------------------------ forward fn --------------------------------

def _forward(x, w1p, b1p, w2p, b2p, *, input_size, num_classes, kp, hp, npad):
    """Pad -> fused pallas_call (M-grid) -> slice.  Intended to run under jax.jit."""
    batch = x.shape[0]
    # Large batches: 256-row tiles fill the 256x256 MXU (v6e/v7x).  Tiny batches:
    # just round to the 8-sublane minimum so we don't waste MXU/EUP on padded rows.
    tile_m = 256 if batch >= 256 else _round_up(batch, _SUBLANE)
    mp = _round_up(batch, tile_m)

    xp = jnp.pad(x.astype(jnp.float32),
                 ((0, mp - batch), (0, kp - input_size)))

    cost = pl.CostEstimate(
        flops=2 * mp * (kp * hp + hp * npad),
        transcendentals=mp * hp,
        bytes_accessed=4 * (mp * kp + kp * hp + hp + hp * npad + npad + mp * npad),
    )

    out = pl.pallas_call(
        _fused_mlp_kernel,
        out_shape=jax.ShapeDtypeStruct((mp, npad), jnp.float32),
        grid=(mp // tile_m,),
        in_specs=[
            pl.BlockSpec((tile_m, kp), lambda i: (i, 0)),   # x: tiled over batch
            pl.BlockSpec((kp, hp), lambda i: (0, 0)),       # W1: resident
            pl.BlockSpec((1, hp), lambda i: (0, 0)),        # b1: resident
            pl.BlockSpec((hp, npad), lambda i: (0, 0)),     # W2: resident
            pl.BlockSpec((1, npad), lambda i: (0, 0)),      # b2: resident
        ],
        out_specs=pl.BlockSpec((tile_m, npad), lambda i: (i, 0)),
        compiler_params=pltpu.CompilerParams(
            dimension_semantics=("parallel",),              # v7x megacore over batch
        ),
        cost_estimate=cost,
    )(xp, w1p, b1p, w2p, b2p)

    return out[:batch, :num_classes]


# ------------------------------- wrapper ---------------------------------

class NeuralNetPallas:
    """Deterministically-initialized Pallas implementation of the PyTorch NeuralNet."""

    def __init__(self, input_size, hidden_size, num_classes, key):
        self.input_size = input_size
        self.hidden_size = hidden_size
        self.num_classes = num_classes

        k1, k2, k3, k4 = jax.random.split(key, 4)

        def uniform(k, shape, fan_in):
            bound = 1.0 / jnp.sqrt(jnp.float32(fan_in))
            return jax.random.uniform(k, shape, jnp.float32, -bound, bound)

        # Unpadded parameters stored (in, out) so the kernel computes x @ W + b
        # (matches PyTorch's x @ W.T with W of shape (out, in)).
        self.w1 = uniform(k1, (input_size, hidden_size), input_size)
        self.b1 = uniform(k2, (hidden_size,), input_size)
        self.w2 = uniform(k3, (hidden_size, num_classes), hidden_size)
        self.b2 = uniform(k4, (num_classes,), hidden_size)

        # Lane-dense, zero-padded copies prepared ONCE at init (not per call).
        self._kp = _round_up(input_size, _LANE)
        self._hp = _round_up(hidden_size, _LANE)
        self._np = _round_up(num_classes, _LANE)
        self._w1p = (jnp.zeros((self._kp, self._hp), jnp.float32)
                     .at[:input_size, :hidden_size].set(self.w1))
        self._b1p = (jnp.zeros((1, self._hp), jnp.float32)
                     .at[0, :hidden_size].set(self.b1))
        self._w2p = (jnp.zeros((self._hp, self._np), jnp.float32)
                     .at[:hidden_size, :num_classes].set(self.w2))
        self._b2p = (jnp.zeros((1, self._np), jnp.float32)
                     .at[0, :num_classes].set(self.b2))

        # One jit over pad -> pallas_call -> slice (kills per-call dispatch overhead).
        self._jit_forward = jax.jit(functools.partial(
            _forward,
            input_size=input_size, num_classes=num_classes,
            kp=self._kp, hp=self._hp, npad=self._np))

    def __call__(self, x):
        return self._jit_forward(x, self._w1p, self._b1p, self._w2p, self._b2p)

    # pure-JAX reference for validation (unpadded weights; literal PyTorch formula —
    # identical to the kernel for all h != 0, which holds for random float inputs).
    def reference(self, x):
        h = x @ self.w1 + self.b1
        act = jnp.maximum(h, 0.0) / h * jnp.abs(jnp.sin(h))
        return act @ self.w2 + self.b2


if __name__ == "__main__":
    input_size, hidden_size, num_classes = 16, 32, 4
    batch = 2

    key = jax.random.PRNGKey(0)
    k_params, k_x = jax.random.split(key)
    model = NeuralNetPallas(input_size, hidden_size, num_classes, k_params)

    x = jax.random.normal(k_x, (batch, input_size), dtype=jnp.float32)

    out = jax.block_until_ready(model(x))
    ref = jax.block_until_ready(model.reference(x))

    assert out.shape == (batch, num_classes), f"bad output shape {out.shape}"
    assert jnp.allclose(out, ref, atol=1e-4, rtol=1e-4), "mismatch vs reference"

    print("KERNEL_OK")
</pallas_src>

<mosaic_0001>
module attributes {stable_mosaic.version = 11 : i64} {
  func.func @_fused_mlp_kernel(%arg0: i32, %arg1: memref<8x128xf32, #tpu.memory_space<vmem>>, %arg2: memref<128x128xf32, #tpu.memory_space<vmem>>, %arg3: memref<1x128xf32, #tpu.memory_space<vmem>>, %arg4: memref<128x128xf32, #tpu.memory_space<vmem>>, %arg5: memref<1x128xf32, #tpu.memory_space<vmem>>, %arg6: memref<8x128xf32, #tpu.memory_space<vmem>>) attributes {dimension_semantics = [#tpu.dimension_semantics<parallel>], iteration_bounds = array<i64: 1>, scalar_prefetch = 0 : i64, scratch_operands = 0 : i64, tpu.core_type = #tpu.core_type<tc>, window_params = [{transform_indices = @transform_0, window_bounds = array<i64: 8, 128>}, {pipeline_mode = #tpu.pipeline_mode<synchronous>, transform_indices = @transform_1, window_bounds = array<i64: 128, 128>}, {pipeline_mode = #tpu.pipeline_mode<synchronous>, transform_indices = @transform_2, window_bounds = array<i64: 1, 128>}, {pipeline_mode = #tpu.pipeline_mode<synchronous>, transform_indices = @transform_3, window_bounds = array<i64: 128, 128>}, {pipeline_mode = #tpu.pipeline_mode<synchronous>, transform_indices = @transform_4, window_bounds = array<i64: 1, 128>}, {transform_indices = @transform_5, window_bounds = array<i64: 8, 128>}]} {
    %c0 = arith.constant 0 : index
    %c0_0 = arith.constant 0 : index
    %0 = vector.load %arg1[%c0, %c0_0] : memref<8x128xf32, #tpu.memory_space<vmem>>, vector<8x128xf32>
    %c0_1 = arith.constant 0 : index
    %c0_2 = arith.constant 0 : index
    %1 = vector.load %arg2[%c0_1, %c0_2] : memref<128x128xf32, #tpu.memory_space<vmem>>, vector<128x128xf32>
    %cst = arith.constant dense<0.000000e+00> : vector<8x128xf32>
    %2 = tpu.matmul %0, %1, %cst {dimension_numbers = #tpu.dot_dimension_numbers<[1], [0], [0], [1], [0, 0, 1, 1], [], []>} : vector<8x128xf32>, vector<128x128xf32>, vector<8x128xf32> -> vector<8x128xf32>
    %c0_3 = arith.constant 0 : index
    %c0_4 = arith.constant 0 : index
    %3 = vector.load %arg3[%c0_3, %c0_4] : memref<1x128xf32, #tpu.memory_space<vmem>>, vector<1x128xf32>
    %4 = vector.broadcast %3 : vector<1x128xf32> to vector<8x128xf32>
    %5 = arith.addf %2, %4 : vector<8x128xf32>
    %cst_5 = arith.constant 0.000000e+00 : f32
    %6 = vector.broadcast %cst_5 : f32 to vector<8x128xf32>
    %7 = arith.cmpf ogt, %5, %6 : vector<8x128xf32>
    %8 = math.sin %5 : vector<8x128xf32>
    %9 = math.absf %8 : vector<8x128xf32>
    %cst_6 = arith.constant 0.000000e+00 : f32
    %10 = vector.broadcast %cst_6 : f32 to vector<8x128xf32>
    %11 = arith.select %7, %9, %10 : vector<8x128xi1>, vector<8x128xf32>
    %c0_7 = arith.constant 0 : index
    %c0_8 = arith.constant 0 : index
    %12 = vector.load %arg4[%c0_7, %c0_8] : memref<128x128xf32, #tpu.memory_space<vmem>>, vector<128x128xf32>
    %cst_9 = arith.constant dense<0.000000e+00> : vector<8x128xf32>
    %13 = tpu.matmul %11, %12, %cst_9 {dimension_numbers = #tpu.dot_dimension_numbers<[1], [0], [0], [1], [0, 0, 1, 1], [], []>} : vector<8x128xf32>, vector<128x128xf32>, vector<8x128xf32> -> vector<8x128xf32>
    %c0_10 = arith.constant 0 : index
    %c0_11 = arith.constant 0 : index
    %14 = vector.load %arg5[%c0_10, %c0_11] : memref<1x128xf32, #tpu.memory_space<vmem>>, vector<1x128xf32>
    %15 = vector.broadcast %14 : vector<1x128xf32> to vector<8x128xf32>
    %16 = arith.addf %13, %15 : vector<8x128xf32>
    %c0_12 = arith.constant 0 : index
    %c0_13 = arith.constant 0 : index
    %17 = vector.load %arg6[%c0_12, %c0_13] : memref<8x128xf32, #tpu.memory_space<vmem>>, vector<8x128xf32>
    tpu.vector_store %arg6[%c0_12, %c0_13], %16 {strides = array<i32>} : memref<8x128xf32, #tpu.memory_space<vmem>>, vector<8x128xf32>,
    return
  }
  func.func @transform_0(%arg0: i32) -> (i32, i32) {
    %c0_i32 = arith.constant 0 : i32
    %c0_i32_0 = arith.constant 0 : i32
    return %arg0, %c0_i32 : i32, i32
  }
  func.func @transform_1(%arg0: i32) -> (i32, i32) {
    %c0_i32 = arith.constant 0 : i32
    %c0_i32_0 = arith.constant 0 : i32
    %c0_i32_1 = arith.constant 0 : i32
    return %c0_i32, %c0_i32_0 : i32, i32
  }
  func.func @transform_2(%arg0: i32) -> (i32, i32) {
    %c0_i32 = arith.constant 0 : i32
    %c0_i32_0 = arith.constant 0 : i32
    %c0_i32_1 = arith.constant 0 : i32
    return %c0_i32, %c0_i32_0 : i32, i32
  }
  func.func @transform_3(%arg0: i32) -> (i32, i32) {
    %c0_i32 = arith.constant 0 : i32
    %c0_i32_0 = arith.constant 0 : i32
    %c0_i32_1 = arith.constant 0 : i32
    return %c0_i32, %c0_i32_0 : i32, i32
  }
  func.func @transform_4(%arg0: i32) -> (i32, i32) {
    %c0_i32 = arith.constant 0 : i32
    %c0_i32_0 = arith.constant 0 : i32
    %c0_i32_1 = arith.constant 0 : i32
    return %c0_i32, %c0_i32_0 : i32, i32
  }
  func.func @transform_5(%arg0: i32) -> (i32, i32) {
    %c0_i32 = arith.constant 0 : i32
    %c0_i32_0 = arith.constant 0 : i32
    return %arg0, %c0_i32 : i32, i32
  }
}

</mosaic_0001>

<bundles_post_ra>
// kernel: _forward.1
= control target key start
LH: loop header
LB: loop body
LE: loop exit
PB: predicated region body
PF: predicated region fallthrough
CT: control target
= control target key end

     0   :  { %10 = vsyncpa [#allocation3], 0  ;;  %s694_s0 = inlined_call_operand.vmem [shape: f32[8,128], index: 0, kind: input, shape index: {}]   ;;  %s695_s1 = inlined_call_operand.hbm [shape: f32[128,128], index: 1, kind: input, shape index: {}]   ;;  %s696_s2 = inlined_call_operand.vmem [shape: f32[1,128], index: 2, kind: input, shape index: {}]   ;;  %s697_s3 = inlined_call_operand.hbm [shape: f32[128,128], index: 3, kind: input, shape index: {}]   ;;  %s698_s4 = inlined_call_operand.vmem [shape: f32[1,128], index: 4, kind: input, shape index: {}]   ;;  %s699_s5 = inlined_call_operand.vmem [shape: f32[8,128], index: 5, kind: output, shape index: {}]  }
   0x1   :  { %11 = vsyncpa [#allocation5], 0  ;;  %s577_s18 = smov [#allocation2]   ;;  %s529_s22 = scalar_lea.hbm %s695_s1, 2048 }
   0x2   :  { %s19_s19 = sshll.u32 %s577_s18, 4  ;;  %p530_p0 = scmp.ne.s32.totalorder %s695_s1, %s529_s22  ;;  %s20_s19 = int_to_ptr.vmem [resolvable:$true] %s19_s19 }
   0x3   :  { %p533_p1 = scmp.lt.u32.totalorder %s529_s22, %s695_s1 }
   0x5   :  { %p535_p2 = pnand %p533_p1, %p530_p0 }
   0x7   :  { %538 = shalt.err (!%p535_p2)
}
   0x8   :  { %s539_s27 = scalar_lea.vmem %s20_s19, 2048  ;;  %p544_p4 = scmp.lt.s32.totalorder %s20_s19, %s20_s19 }
   0x9   :  { %p540_p3 = scmp.ne.s32.totalorder %s20_s19, %s539_s27  ;;  %p545_p5 = scmp.lt.s32.totalorder %s539_s27, %s539_s27 }
   0xb   :  { %p546_p6 = por %p545_p5, %p544_p4 }
   0xd   :  { %p547_p7 = pnand %p546_p6, %p540_p3 }
   0xf   :  { %550 = shalt.err (!%p547_p7)
}
  0x10   :  { %s578_s28 = smov 128   ;;  %s579_s29 = smov 8  }
  0x11   :  { %25 = dma.hbm_to_vmem [thread:$0]  %s695_s1, 2048, %s20_s19, [#allocation3], %s578_s28, %s578_s28, %s579_s29  }
  0x12   :  { %s580_s7 = smov [#allocation4]   ;;  %s551_s11 = scalar_lea.hbm %s697_s3, 2048 }
  0x13   :  { %s33_s8 = sshll.u32 %s580_s7, 4  ;;  %p552_p8 = scmp.ne.s32.totalorder %s697_s3, %s551_s11  ;;  %s34_s8 = int_to_ptr.vmem [resolvable:$true] %s33_s8 }
  0x14   :  { %p555_p9 = scmp.lt.u32.totalorder %s551_s11, %s697_s3 }
  0x16   :  { %p557_p10 = pnand %p555_p9, %p552_p8 }
  0x18   :  { %560 = shalt.err (!%p557_p10)
}
  0x19   :  { %s561_s16 = scalar_lea.vmem %s34_s8, 2048  ;;  %p566_p12 = scmp.lt.s32.totalorder %s34_s8, %s34_s8 }
  0x1a   :  { %p562_p11 = scmp.ne.s32.totalorder %s34_s8, %s561_s16  ;;  %p567_p13 = scmp.lt.s32.totalorder %s561_s16, %s561_s16 }
  0x1c   :  { %p568_p0 = por %p567_p13, %p566_p12 }
  0x1e   :  { %p569_p1 = pnand %p568_p0, %p562_p11 }
  0x20   :  { %572 = shalt.err (!%p569_p1)
}
  0x21   :  { %39 = dma.hbm_to_vmem [thread:$0]  %s697_s3, 2048, %s34_s8, [#allocation5], %s578_s28, %s578_s28, %s579_s29  }
  0x22   :  { %573 = dma.done.wait [#allocation3], 2048  }
  0x23   :  { %574 = vsyncadd [#allocation3], 4294965248 }
  0x24   :  { %575 = dma.done.wait [#allocation5], 2048  }
  0x25   :  { %576 = vsyncadd [#allocation5], 4294965248  ;;  %v581_v0 = vmov 0.0|0.0   ;;  %vm582_vm0 = vmmov 0   ;;  %v583_v1 = vmov 0.0   ;;  %v49_v2 = vld [vmem:[#allocation2] sm:$0xff] }
  0x26   :  { %460 = vmatprep.subr.bf16.mxu0 %v581_v0  ;;  %422 = vmatprep.mubr.msk.f32.mxu0 %vm582_vm0, %v583_v1  ;;  %v50_v3 = vld [vmem:[#allocation2 + $0x8] sm:$0xff]  ;;  %v51_v4 = vld [vmem:[#allocation2 + $0x10] sm:$0xff]  ;;  %v52_v6 = vld [vmem:[#allocation2 + $0x18] sm:$0xff] }
  0x27   :  { %484 = vmatprep.subr.bf16.mxu1 %v581_v0  ;;  %457 = vmatprep.mubr.msk.f32.mxu1 %vm582_vm0, %v583_v1  ;;  %v461_v5 = vpack.c.bf16 %v50_v3, %v49_v2  ;;  %v464_v7 = vpack.c.bf16 %v52_v6, %v51_v4  ;;  %v53_v8 = vld [vmem:[#allocation2 + $0x20] sm:$0xff]  ;;  %v54_v9 = vld [vmem:[#allocation2 + $0x28] sm:$0xff]  ;;  %v55_v11 = vld [vmem:[#allocation2 + $0x30] sm:$0xff]  ;;  %v584_v1 = vmov 683565275  }
  0x28   :  { %v467_v10 = vpack.c.bf16 %v54_v9, %v53_v8  ;;  %v56_v12 = vld [vmem:[#allocation2 + $0x38] sm:$0xff]  ;;  %v57_v14 = vld [vmem:[#allocation2 + $0x40] sm:$0xff]  ;;  %v58_v15 = vld [vmem:[#allocation2 + $0x48] sm:$0xff]  ;;  %v585_v3 = vmov 2475754826  }
  0x29   :  { %462 = vmatpush3.bf16.msra.mxu0 %v461_v5  ;;  %v470_v13 = vpack.c.bf16 %v56_v12, %v55_v11  ;;  %v473_v16 = vpack.c.bf16 %v58_v15, %v57_v14  ;;  %v59_v17 = vld [vmem:[#allocation2 + $0x50] sm:$0xff]  ;;  %v60_v18 = vld [vmem:[#allocation2 + $0x58] sm:$0xff]  ;;  %v61_v20 = vld [vmem:[#allocation2 + $0x60] sm:$0xff]  ;;  %v586_v6 = vmov 2131351028  }
  0x2a   :  { %463 = vmatprep.subr.bf16.mxu0 %v581_v0  ;;  %v476_v19 = vpack.c.bf16 %v60_v18, %v59_v17  ;;  %v62_v21 = vld [vmem:[#allocation2 + $0x68] sm:$0xff]  ;;  %v63_v23 = vld [vmem:[#allocation2 + $0x70] sm:$0xff]  ;;  %v64_v24 = vld [vmem:[#allocation2 + $0x78] sm:$0xff]  ;;  %v587_v9 = vmov 2102212464  }
  0x2b   :  { %v479_v22 = vpack.c.bf16 %v62_v21, %v61_v20  ;;  %v482_v25 = vpack.c.bf16 %v64_v24, %v63_v23  ;;  %v48_v26 = vld [vmem:[%s694_s0] sm:$0xff]  ;;  %v250_v28 = vld [vmem:[#allocation4 + $0x8] sm:$0xff]  ;;  %v251_v30 = vld [vmem:[#allocation4 + $0x10] sm:$0xff]  ;;  %v588_v12 = vmov 920167782  }
  0x2c   :  { %v249_v27 = vld [vmem:[#allocation4] sm:$0xff]  ;;  %v252_v31 = vld [vmem:[#allocation4 + $0x18] sm:$0xff]  ;;  %v254_v34 = vld [vmem:[#allocation4 + $0x28] sm:$0xff]  ;;  %v589_v15 = vmov 1326507024  }
  0x2d   :  { %465 = vmatpush3.bf16.msra.mxu0 %v464_v7  ;;  %v485_v29 = vpack.c.bf16 %v250_v28, %v249_v27  ;;  %v488_v32 = vpack.c.bf16 %v252_v31, %v251_v30  ;;  %v253_v33 = vld [vmem:[#allocation4 + $0x20] sm:$0xff]  ;;  %v255_v36 = vld [vmem:[#allocation4 + $0x30] sm:$0xff]  ;;  %v256_v37 = vld [vmem:[#allocation4 + $0x38] sm:$0xff] }
  0x2e   :  { %466 = vmatprep.subr.bf16.mxu0 %v581_v0  ;;  %v491_v35 = vpack.c.bf16 %v254_v34, %v253_v33  ;;  %v257_v38 = vld [vmem:[#allocation4 + $0x40] sm:$0xff]  ;;  %v494_v39 = vpack.c.bf16 %v256_v37, %v255_v36  ;;  %v258_v40 = vld [vmem:[#allocation4 + $0x48] sm:$0xff]  ;;  %v259_v42 = vld [vmem:[#allocation4 + $0x50] sm:$0xff] }
  0x2f   :  { %486 = vmatpush3.bf16.msra.mxu1 %v485_v29  ;;  %v497_v41 = vpack.c.bf16 %v258_v40, %v257_v38  ;;  %v260_v43 = vld [vmem:[#allocation4 + $0x58] sm:$0xff]  ;;  %v261_v45 = vld [vmem:[#allocation4 + $0x60] sm:$0xff]  ;;  %v262_v46 = vld [vmem:[#allocation4 + $0x68] sm:$0xff] }
  0x30   :  { %487 = vmatprep.subr.bf16.mxu1 %v581_v0  ;;  %v500_v44 = vpack.c.bf16 %v260_v43, %v259_v42  ;;  %v503_v47 = vpack.c.bf16 %v262_v46, %v261_v45  ;;  %v263_v48 = vld [vmem:[#allocation4 + $0x70] sm:$0xff]  ;;  %v264_v49 = vld [vmem:[#allocation4 + $0x78] sm:$0xff]  ;;  %v349_v51 = vld [vmem:[%s696_s2] ss:$0 sm:$0xff] }
  0x31   :  { %468 = vmatpush3.bf16.msra.mxu0 %v467_v10  ;;  %v506_v50 = vpack.c.bf16 %v264_v49, %v263_v48 }
  0x32   :  { %469 = vmatprep.subr.bf16.mxu0 %v581_v0 }
  0x33   :  { %489 = vmatpush3.bf16.msra.mxu1 %v488_v32 }
  0x34   :  { %490 = vmatprep.subr.bf16.mxu1 %v581_v0 }
  0x35   :  { %471 = vmatpush3.bf16.msra.mxu0 %v470_v13 }
  0x36   :  { %472 = vmatprep.subr.bf16.mxu0 %v581_v0 }
  0x37   :  { %492 = vmatpush3.bf16.msra.mxu1 %v491_v35 }
  0x38   :  { %493 = vmatprep.subr.bf16.mxu1 %v581_v0 }
  0x39   :  { %474 = vmatpush3.bf16.msra.mxu0 %v473_v16 }
  0x3a   :  { %475 = vmatprep.subr.bf16.mxu0 %v581_v0 }
  0x3b   :  { %495 = vmatpush3.bf16.msra.mxu1 %v494_v39 }
  0x3c   :  { %496 = vmatprep.subr.bf16.mxu1 %v581_v0 }
  0x3d   :  { %477 = vmatpush3.bf16.msra.mxu0 %v476_v19 }
  0x3e   :  { %478 = vmatprep.subr.bf16.mxu0 %v581_v0 }
  0x3f   :  { %498 = vmatpush3.bf16.msra.mxu1 %v497_v41 }
  0x40   :  { %499 = vmatprep.subr.bf16.mxu1 %v581_v0 }
  0x41   :  { %480 = vmatpush3.bf16.msra.mxu0 %v479_v22 }
  0x42   :  { %481 = vmatprep.subr.bf16.mxu0 %v581_v0 }
  0x43   :  { %501 = vmatpush3.bf16.msra.mxu1 %v500_v44 }
  0x44   :  { %502 = vmatprep.subr.bf16.mxu1 %v581_v0 }
  0x45   :  { %483 = vmatpush3.bf16.msra.mxu0 %v482_v25 }
  0x47   :  { %504 = vmatpush3.bf16.msra.mxu1 %v503_v47 }
  0x48   :  { %423 = vmatmul.mubr.f32.vlgmr.msra.gmra.mrb[0].mxu0 %v48_v26  ;;  %505 = vmatprep.subr.bf16.mxu1 %v581_v0 }
  0x4b   :  { %507 = vmatpush3.bf16.msra.mxu1 %v506_v50 }
 0x11b   :  { %v138_v52 = vpop.f32.mrb[0].mxu0 }
 0x11c   :  { %v666_v53 = vadd.f32 %v349_v51, %v138_v52  ;;  %v424_v54 = vpop.f32.mrb[1].mxu0 }
 0x11e   :  { %v146_v55 = vand.u32 2139095040, %v666_v53  ;;  %v143_v59 = vand.u32 2147483647, %v666_v53  ;;  %vm145_vm8 = vcmp.lt.s32.totalorder %v666_v53, 0  ;;  %vm235_vm13 = vweird.f32 %v666_v53 }
 0x11f   :  { %vm142_vm14 = vcmp.gt.f32.partialorder %v666_v53, 0.0 }
 0x120   :  { %v147_v56 = vshrl.u32 %v146_v55, 23  ;;  %v150_v62 = vand.u32 8388607, %v143_v59  ;;  %vm144_vm9 = vcmp.le.f32.partialorder %v143_v59, 0.7853982 }
 0x122   :  { %v350_v57 = vadd.s32 4294967169, %v147_v56  ;;  %v151_v17 = vor.u32 8388608, %v150_v62 }
 0x124   :  { %v153_v58 = vadd.s32 1, %v350_v57  ;;  %v191_v31 = vshll.u32 %v151_v17, 8 }
 0x126   :  { %vm154_vm1 = vcmp.gt.s32.totalorder %v153_v58, 0 }
 0x127   :  { %v155_v60 = vsel %vm154_vm1, %v153_v58, 0 }
 0x128   :  { %v157_v61 = vand.u32 31, %v155_v60  ;;  %v156_v0 = vshrl.u32 %v155_v60, 5 }
 0x12a   :  { %v158_v63 = vsub.s32 32, %v157_v61  ;;  %v160_v2 = vshll.u32 %v584_v1, %v157_v61  ;;  %v163_v4 = vshll.u32 %v585_v3, %v157_v61  ;;  %v166_v8 = vshll.u32 %v586_v6, %v157_v61 }
 0x12b   :  { %v169_v11 = vshll.u32 %v587_v9, %v157_v61  ;;  %v172_v14 = vshll.u32 %v588_v12, %v157_v61  ;;  %vm175_vm2 = vcmp.lt.s32.totalorder %v156_v0, 1  ;;  %vm178_vm3 = vcmp.lt.s32.totalorder %v156_v0, 4 }
 0x12c   :  { %v161_v5 = vshrl.u32 %v585_v3, %v158_v63  ;;  %v164_v7 = vshrl.u32 %v586_v6, %v158_v63  ;;  %v167_v10 = vshrl.u32 %v587_v9, %v158_v63  ;;  %v170_v13 = vshrl.u32 %v588_v12, %v158_v63 }
 0x12d   :  { %v173_v16 = vshrl.u32 %v589_v15, %v158_v63  ;;  %v159_v26 = vshrl.u32 %v584_v1, %v158_v63  ;;  %vm177_vm4 = vcmp.lt.s32.totalorder %v156_v0, 3  ;;  %vm176_vm5 = vcmp.lt.s32.totalorder %v156_v0, 2 }
 0x12e   :  { %v162_v18 = vor.u32 %v161_v5, %v160_v2  ;;  %v165_v19 = vor.u32 %v164_v7, %v163_v4  ;;  %v168_v20 = vor.u32 %v167_v10, %v166_v8  ;;  %v171_v21 = vor.u32 %v170_v13, %v169_v11 }
 0x12f   :  { %v174_v22 = vor.u32 %v173_v16, %v172_v14 }
 0x130   :  { %v180_v23 = vsel %vm178_vm3, %v168_v20, 2102212464  ;;  %v183_v24 = vsel %vm175_vm2, %v162_v18, %v165_v19  ;;  %v187_v25 = vsel %vm175_vm2, %v165_v19, %v168_v20  ;;  %v184_v27 = vsel %vm178_vm3, %v171_v21, 920167782 }
 0x131   :  { %v188_v28 = vsel %vm178_vm3, %v174_v22, 1326507024  ;;  %v185_v29 = vsel %vm177_vm4, %v168_v20, %v184_v27  ;;  %v179_v32 = vsel %vm175_vm2, %v159_v26, %v162_v18  ;;  %v181_v33 = vsel %vm177_vm4, %v165_v19, %v180_v23  ;;  %v354_v20 = vld [vmem:[%s698_s4] ss:$0 sm:$0xff] }
 0x132   :  { %v189_v30 = vsel %vm177_vm4, %v171_v21, %v188_v28  ;;  %v186_v34 = vsel %vm176_vm5, %v183_v24, %v185_v29  ;;  %v182_v40 = vsel %vm176_vm5, %v179_v32, %v181_v33 }
 0x133   :  { %v190_v35 = vsel %vm176_vm5, %v187_v25, %v189_v30  ;;  %v675_v38 = vmul.u32.u64.low %v191_v31, %v186_v34  ;;  %v676_v39 = vmul.u32.u64.high %v191_v31, %v186_v34, %v675_v38  ;;  %v198_v42 = vmul.u32 %v191_v31, %v182_v40 }
 0x134   :  { %v672_v36 = vmul.u32.u64.low %v191_v31, %v190_v35  ;;  %v673_v37 = vmul.u32.u64.high %v191_v31, %v190_v35, %v672_v36 }
 0x135   :  { %v201_v41 = vadd.s32 1, %v676_v39 }
 0x136   :  { %vm200_vm6 = vc.u32 %v673_v37, %v675_v38  ;;  %v199_v55 = vadd.s32 %v675_v38, %v673_v37 }
 0x137   :  { %v202_v43 = vsel %vm200_vm6, %v201_v41, %v676_v39 }
 0x138   :  { %v203_v44 = vadd.s32 %v202_v43, %v198_v42 }
 0x13a   :  { %v204_v45 = vadd.s32 536870912, %v203_v44 }
 0x13c   :  { %v205_v46 = vshrl.u32 %v204_v45, 30 }
 0x13e   :  { %v206_v47 = vshll.u32 %v205_v46, 30  ;;  %v229_v4 = vsub.s32 4, %v205_v46 }
 0x140   :  { %v207_v48 = vsub.s32 %v203_v44, %v206_v47  ;;  %v230_v7 = vsel %vm145_vm8, %v229_v4, %v205_v46 }
 0x141   :  { %v232_v9 = vsel %vm144_vm9, 0, %v230_v7 }
 0x142   :  { %v209_v49 = vsub.s32 0, %v207_v48  ;;  %v236_v10 = vadd.s32 3, %v232_v9 }
 0x144   :  { %v351_v50 = vmin.u32 %v209_v49, %v207_v48  ;;  %v237_v11 = vand.u32 3, %v236_v10 }
 0x146   :  { %v211_v51 = vclz %v351_v50  ;;  %vm242_vm10 = vcmp.eq.s32.totalorder %v237_v11, 2  ;;  %vm239_vm11 = vcmp.eq.s32.totalorder %v237_v11, 0  ;;  %vm238_vm12 = vcmp.lt.s32.totalorder %v237_v11, 2 }
 0x148   :  { %v352_v52 = vadd.s32 4294967294, %v211_v51 }
 0x14a   :  { %vm353_vm7 = vcmp.lt.s32.totalorder %v352_v52, 0 }
 0x14b   :  { %v214_v54 = vsel %vm353_vm7, 0, %v352_v52 }
 0x14c   :  { %v215_v56 = vsub.s32 32, %v214_v54  ;;  %v219_v57 = vsub.s32 4294967266, %v214_v54  ;;  %v216_v58 = vshll.u32 %v207_v48, %v214_v54 }
 0x14e   :  { %v217_v60 = vshrl.u32 %v199_v55, %v215_v56  ;;  %v220_v61 = vadd.s32 127, %v219_v57 }
 0x150   :  { %v218_v62 = vor.u32 %v217_v60, %v216_v58  ;;  %v221_v63 = vshll.u32 %v220_v61, 23 }
 0x152   :  { %v222_v0 = vor.u32 4788187, %v221_v63  ;;  %v225_v2 = vcvt.s32.f32 %v218_v62 }
 0x154   :  { %v223_v1 = vand.u32 2147483647, %v222_v0 }
 0x156   :  { %v226_v3 = vmul.f32 %v225_v2, %v223_v1 }
 0x158   :  { %v227_v5 = vxor.u32 2147483648, %v226_v3 }
 0x15a   :  { %v228_v6 = vsel %vm145_vm8, %v227_v5, %v226_v3 }
 0x15b   :  { %v231_v8 = vsel %vm144_vm9, %v666_v53, %v228_v6 }
 0x15c   :  { %525 = vcosq.f32 %v231_v8 }
 0x15d   :  { %527 = vsinq.f32 %v231_v8 }
 0x166   :  { %v526_v12 = vpop.eup %525 }
 0x167   :  { %v528_v13 = vpop.eup %527  ;;  %v243_v14 = vxor.u32 2147483648, %v526_v12 }
 0x168   :  { %v240_v15 = vxor.u32 2147483648, %v528_v13 }
 0x169   :  { %v244_v16 = vsel %vm242_vm10, %v243_v14, %v528_v13 }
 0x16a   :  { %v241_v17 = vsel %vm239_vm11, %v526_v12, %v240_v15 }
 0x16b   :  { %v245_v59 = vsel %vm238_vm12, %v241_v17, %v244_v16 }
 0x16c   :  { %v246_v18 = vsel %vm235_vm13, nan, %v245_v59 }
 0x16d   :  { %v247_v19 = vand.u32 2147483647, %v246_v18 }
 0x16f   :  { %458 = vmatmul.mubr.msk.f32.vlgmr.msra.gmra.mrb[0].mxu1 %vm142_vm14, %v247_v19 }
 0x242   :  { %v338_v21 = vpop.f32.mrb[0].mxu1 }
 0x243   :  { %v339_v22 = vadd.f32 %v354_v20, %v338_v21  ;;  %v459_v23 = vpop.f32.mrb[1].mxu1 }
 0x245   :  { %342 = vst [vmem:[%s699_s5] sm:$0xff] %v339_v22 }
 0x246   :  { %347 = vsyncpa [#allocation3], 1 }
 0x247   :  { %348 = vsyncpa [#allocation5], 1 }

</bundles_post_ra>
